<compile_context>
chip_gen: v6e
topology: v6e:2x2x1
jax: 0.10.0
libtpu: 0.0.40
codegen_flags: <defaults>
</compile_context>

<pallas_src>
import jax
import jax.numpy as jnp
from jax import lax
from jax.experimental import pallas as pl
from jax.experimental.pallas import tpu as pltpu


def _lora_linear_kernel(x_ref, w_ref, xa_ref, b_ref, bias_ref, o_ref):
    """One (i, j, k) grid step of out = x @ W^T + (x@A) @ (alpha*B) + bias.

    x_ref:    (tm, tk)      x tile (f32 or bf16)
    w_ref:    (tn, tk)      W tile in PyTorch (out_dim, in_dim) layout
    xa_ref:   (tm, rank)    precomputed x @ A (f32)
    b_ref:    (rank, tn)    alpha * B tile (f32)
    bias_ref: (1, tn)       bias tile (f32)
    o_ref:    (tm, tn)      f32 output tile, resident across the k axis
    """
    k = pl.program_id(2)
    nk = pl.num_programs(2)

    # Base matmul: contract x's in_dim with W's in_dim (W stays in its native
    # (out_dim, in_dim) layout -> no wrapper transpose / extra HBM pass).
    partial = lax.dot_general(
        x_ref[...], w_ref[...],
        dimension_numbers=(((1,), (1,)), ((), ())),
        preferred_element_type=jnp.float32)

    @pl.when(k == 0)
    def _init():
        o_ref[...] = partial

    @pl.when(k > 0)
    def _accum():
        o_ref[...] = o_ref[...] + partial

    @pl.when(k == nk - 1)
    def _finalize():
        xa = xa_ref[...]          # (tm, rank) f32
        b = b_ref[...]            # (rank, tn) f32, alpha already folded in
        rank = xa.shape[1]
        if rank <= 16:
            # Unrolled VPU outer product: avoids a rank-padded MXU matmul per
            # output tile; rank is a static Python int so this unrolls at trace.
            lora = xa[:, 0:1] * b[0:1, :]
            for r in range(1, rank):
                lora = lora + xa[:, r:r + 1] * b[r:r + 1, :]
        else:
            lora = jnp.dot(xa, b, preferred_element_type=jnp.float32)
        o_ref[...] = o_ref[...] + lora + bias_ref[...]


def _round_up(x, m):
    return ((x + m - 1) // m) * m


def _pick_tile(dim, preferred):
    """Largest preferred tile that evenly divides dim (dim is pre-padded)."""
    for t in preferred:
        if t <= dim and dim % t == 0:
            return t
    return dim


def _pad2(a, rows, cols):
    pr, pc = rows - a.shape[0], cols - a.shape[1]
    if pr or pc:
        a = jnp.pad(a, ((0, pr), (0, pc)))
    return a


def linear_with_lora_merged(x, weight, bias, A, B, alpha, *, mxu_dtype=None):
    """
    x:      (batch, in_dim)   float32
    weight: (out_dim, in_dim) float32  (PyTorch nn.Linear layout, NOT transposed)
    bias:   (out_dim,)        float32
    A:      (in_dim, rank)    float32
    B:      (rank, out_dim)   float32
    mxu_dtype: None (f32 operands) or jnp.bfloat16 (bf16-streamed x/W, f32 acc).
    """
    batch, in_dim = x.shape
    out_dim, in_dim_w = weight.shape
    assert in_dim_w == in_dim, "weight/in_dim mismatch"
    rank = A.shape[1]

    # LoRA pre-pass: xa = x @ A, a tiny (batch, rank) matmul done once per call
    # (f32, outside the kernel) so the hot loop never recomputes it per tile.
    xa = jnp.dot(x, A, preferred_element_type=jnp.float32)

    # Fold alpha into the tiny (rank, out_dim) B once -> no per-tile scalar mul.
    b_scaled = (B * jnp.float32(alpha)).astype(jnp.float32)
    bias2d = bias.astype(jnp.float32).reshape(1, out_dim)

    # Optional bf16 MXU operands / bf16 weight streaming (v6e/v7x).  All
    # elementwise + accumulation math stays f32 (v5e VPU has no bf16 ALU).
    if mxu_dtype is not None:
        x_in = x.astype(mxu_dtype)
        w_in = weight.astype(mxu_dtype)
    else:
        x_in = x
        w_in = weight

    # Pad to (8,128)-legal multiples so every tile is lane-dense and no axis
    # ever degenerates to a single giant block.
    m_p = _round_up(batch, 8)
    n_p = _round_up(out_dim, 128)
    k_p = _round_up(in_dim, 128)
    x_in = _pad2(x_in, m_p, k_p)
    w_in = _pad2(w_in, n_p, k_p)
    xa = _pad2(xa, m_p, rank)
    b_scaled = _pad2(b_scaled, rank, n_p)
    bias2d = _pad2(bias2d, 1, n_p)

    # Big tiles: amortize per-grid-step overhead, keep DMAs long & dense.
    # Cap at (512, 512, 2048) => ~20 MiB double-buffered f32, fits v7x 64 MiB.
    tm = _pick_tile(m_p, (512, 256, 128, 64, 32, 16, 8))
    tn = _pick_tile(n_p, (512, 256, 128))
    tk = _pick_tile(k_p, (2048, 1024, 512, 256, 128))

    # v7x megacore: keep >=2 parallel grid steps when batch fits one tm tile.
    while (m_p // tm) * (n_p // tn) < 2 and tn > 128:
        tn //= 2

    grid = (m_p // tm, n_p // tn, k_p // tk)
    grid_m, grid_n, grid_k = grid

    # Scoped VMEM: double-buffered inputs + resident output tile, with 2x
    # headroom; at least 32 MiB (v5e default is ~16 MiB), at most 64 MiB (v7x).
    xw_bytes = jnp.dtype(x_in.dtype).itemsize
    vmem_need = (2 * (tm * tk * xw_bytes + tn * tk * xw_bytes
                      + tm * rank * 4 + rank * tn * 4 + tn * 4)
                 + 2 * tm * tn * 4)
    vmem_limit = int(min(max(2 * vmem_need, 32 * 1024 * 1024),
                         64 * 1024 * 1024))

    flops = 2 * m_p * n_p * k_p + 2 * m_p * rank * n_p
    bytes_accessed = (m_p * k_p * xw_bytes * grid_n      # x re-read per col tile
                      + n_p * k_p * xw_bytes * grid_m    # W re-read per row tile
                      + m_p * rank * 4 * grid_n
                      + rank * n_p * 4 * grid_m
                      + n_p * 4 * grid_m
                      + m_p * n_p * 4)                   # output write

    out = pl.pallas_call(
        _lora_linear_kernel,
        out_shape=jax.ShapeDtypeStruct((m_p, n_p), jnp.float32),
        grid_spec=pltpu.PrefetchScalarGridSpec(
            num_scalar_prefetch=0,
            grid=grid,
            in_specs=[
                pl.BlockSpec((tm, tk), lambda i, j, k: (i, k)),     # x
                pl.BlockSpec((tn, tk), lambda i, j, k: (j, k)),     # W (out,in)
                pl.BlockSpec((tm, rank), lambda i, j, k: (i, 0)),   # x @ A
                pl.BlockSpec((rank, tn), lambda i, j, k: (0, j)),   # alpha*B
                pl.BlockSpec((1, tn), lambda i, j, k: (0, j)),      # bias
            ],
            out_specs=pl.BlockSpec((tm, tn), lambda i, j, k: (i, j)),
        ),
        compiler_params=pltpu.CompilerParams(
            dimension_semantics=("parallel", "parallel", "arbitrary"),
            vmem_limit_bytes=vmem_limit),
        cost_estimate=pl.CostEstimate(
            flops=flops, transcendentals=0, bytes_accessed=bytes_accessed),
    )(x_in, w_in, xa, b_scaled, bias2d)

    if (m_p, n_p) != (batch, out_dim):
        out = out[:batch, :out_dim]
    return out


def _reference(x, weight, bias, A, B, alpha):
    """Pure-JAX reference: same math as the PyTorch forward."""
    combined = weight + alpha * jnp.dot(A, B, precision=lax.Precision.HIGHEST).T
    return jnp.dot(x, combined.T, precision=lax.Precision.HIGHEST) + bias


if __name__ == "__main__":
    key = jax.random.PRNGKey(0)
    k_x, k_w, k_b, k_a, k_b2 = jax.random.split(key, 5)

    # (batch, in_dim, out_dim, rank, alpha)
    configs = [
        (8, 256, 128, 4, 2.0),      # aligned shapes, single-ish grid
        (16, 1024, 256, 8, 0.5),    # multi-step K reduction exercises pl.when
        (5, 200, 72, 4, 1.5),       # odd shapes exercise the pad/slice path
    ]

    for (batch, in_dim, out_dim, rank, alpha) in configs:
        x = jax.random.normal(k_x, (batch, in_dim), dtype=jnp.float32)
        weight = jax.random.normal(k_w, (out_dim, in_dim), dtype=jnp.float32) * 0.05
        bias = jax.random.normal(k_b, (out_dim,), dtype=jnp.float32) * 0.05
        std_dev = 1.0 / jnp.sqrt(jnp.float32(rank))
        A = jax.random.normal(k_a, (in_dim, rank), dtype=jnp.float32) * std_dev
        # B is zero-initialized in LoRALayer; also test a nonzero copy.
        B_zero = jnp.zeros((rank, out_dim), dtype=jnp.float32)
        B_nz = jax.random.normal(k_b2, (rank, out_dim), dtype=jnp.float32) * 0.1

        for B in (B_zero, B_nz):
            ref = _reference(x, weight, bias, A, B, alpha)

            # f32 operand path: tight tolerance.
            out = linear_with_lora_merged(x, weight, bias, A, B, alpha)
            out = jax.block_until_ready(out)
            assert out.shape == (batch, out_dim)
            err = jnp.max(jnp.abs(out - ref))
            assert jnp.allclose(out, ref, atol=1e-3, rtol=1e-3), (
                f"f32 config {(batch, in_dim, out_dim, rank)}: max err {err}")

            # bf16-operand path (v6e/v7x optimization): looser tolerance.
            out_bf = linear_with_lora_merged(x, weight, bias, A, B, alpha,
                                             mxu_dtype=jnp.bfloat16)
            out_bf = jax.block_until_ready(out_bf)
            err_bf = jnp.max(jnp.abs(out_bf - ref))
            assert jnp.allclose(out_bf, ref, atol=5e-2, rtol=5e-2), (
                f"bf16 config {(batch, in_dim, out_dim, rank)}: max err {err_bf}")

    print("KERNEL_OK")
</pallas_src>

<mosaic_0001>
module attributes {stable_mosaic.version = 11 : i64} {
  func.func @_lora_linear_kernel(%arg0: i32, %arg1: i32, %arg2: i32, %arg3: memref<8x256xf32, #tpu.memory_space<vmem>>, %arg4: memref<128x256xf32, #tpu.memory_space<vmem>>, %arg5: memref<8x4xf32, #tpu.memory_space<vmem>>, %arg6: memref<4x128xf32, #tpu.memory_space<vmem>>, %arg7: memref<1x128xf32, #tpu.memory_space<vmem>>, %arg8: memref<8x128xf32, #tpu.memory_space<vmem>>) attributes {dimension_semantics = [#tpu.dimension_semantics<parallel>, #tpu.dimension_semantics<parallel>, #tpu.dimension_semantics<arbitrary>], iteration_bounds = array<i64: 1, 1, 1>, scalar_prefetch = 0 : i64, scratch_operands = 0 : i64, tpu.core_type = #tpu.core_type<tc>, window_params = [{transform_indices = @transform_0, window_bounds = array<i64: 8, 256>}, {transform_indices = @transform_1, window_bounds = array<i64: 128, 256>}, {transform_indices = @transform_2, window_bounds = array<i64: 8, 4>}, {transform_indices = @transform_3, window_bounds = array<i64: 4, 128>}, {transform_indices = @transform_4, window_bounds = array<i64: 1, 128>}, {transform_indices = @transform_5, window_bounds = array<i64: 8, 128>}]} {
    %c0 = arith.constant 0 : index
    %c0_0 = arith.constant 0 : index
    %0 = vector.load %arg3[%c0, %c0_0] : memref<8x256xf32, #tpu.memory_space<vmem>>, vector<8x256xf32>
    %c0_1 = arith.constant 0 : index
    %c0_2 = arith.constant 0 : index
    %1 = vector.load %arg4[%c0_1, %c0_2] : memref<128x256xf32, #tpu.memory_space<vmem>>, vector<128x256xf32>
    %cst = arith.constant dense<0.000000e+00> : vector<8x128xf32>
    %2 = tpu.matmul %0, %1, %cst {dimension_numbers = #tpu.dot_dimension_numbers<[1], [1], [0], [0], [0, 0, 1, 0], [], []>} : vector<8x256xf32>, vector<128x256xf32>, vector<8x128xf32> -> vector<8x128xf32>
    %c0_i32 = arith.constant 0 : i32
    %3 = arith.cmpi eq, %arg2, %c0_i32 : i32
    %4 = arith.extui %3 : i1 to i32
    %c0_i32_3 = arith.constant 0 : i32
    %5 = arith.cmpi ne, %4, %c0_i32_3 : i32
    scf.if %5 {
      %c0_8 = arith.constant 0 : index
      %c0_9 = arith.constant 0 : index
      %12 = vector.load %arg8[%c0_8, %c0_9] : memref<8x128xf32, #tpu.memory_space<vmem>>, vector<8x128xf32>
      tpu.vector_store %arg8[%c0_8, %c0_9], %2 {strides = array<i32>} : memref<8x128xf32, #tpu.memory_space<vmem>>, vector<8x128xf32>,
    } else {
    }
    %c0_i32_4 = arith.constant 0 : i32
    %6 = arith.cmpi sgt, %arg2, %c0_i32_4 : i32
    %7 = arith.extui %6 : i1 to i32
    %c0_i32_5 = arith.constant 0 : i32
    %8 = arith.cmpi ne, %7, %c0_i32_5 : i32
    scf.if %8 {
      %c0_8 = arith.constant 0 : index
      %c0_9 = arith.constant 0 : index
      %12 = vector.load %arg8[%c0_8, %c0_9] : memref<8x128xf32, #tpu.memory_space<vmem>>, vector<8x128xf32>
      %13 = arith.addf %12, %2 : vector<8x128xf32>
      %c0_10 = arith.constant 0 : index
      %c0_11 = arith.constant 0 : index
      %14 = vector.load %arg8[%c0_10, %c0_11] : memref<8x128xf32, #tpu.memory_space<vmem>>, vector<8x128xf32>
      tpu.vector_store %arg8[%c0_10, %c0_11], %13 {strides = array<i32>} : memref<8x128xf32, #tpu.memory_space<vmem>>, vector<8x128xf32>,
    } else {
    }
    %c0_i32_6 = arith.constant 0 : i32
    %9 = arith.cmpi eq, %arg2, %c0_i32_6 : i32
    %10 = arith.extui %9 : i1 to i32
    %c0_i32_7 = arith.constant 0 : i32
    %11 = arith.cmpi ne, %10, %c0_i32_7 : i32
    scf.if %11 {
      %c0_8 = arith.constant 0 : index
      %c0_9 = arith.constant 0 : index
      %12 = vector.load %arg5[%c0_8, %c0_9] : memref<8x4xf32, #tpu.memory_space<vmem>>, vector<8x4xf32>
      %c0_10 = arith.constant 0 : index
      %c0_11 = arith.constant 0 : index
      %13 = vector.load %arg6[%c0_10, %c0_11] : memref<4x128xf32, #tpu.memory_space<vmem>>, vector<4x128xf32>
      %14 = vector.extract_strided_slice %12 {offsets = [0, 0], sizes = [8, 1], strides = [1, 1]} : vector<8x4xf32> to vector<8x1xf32>
      %15 = vector.extract_strided_slice %13 {offsets = [0, 0], sizes = [1, 128], strides = [1, 1]} : vector<4x128xf32> to vector<1x128xf32>
      %16 = vector.broadcast %14 : vector<8x1xf32> to vector<8x128xf32>
      %17 = vector.broadcast %15 : vector<1x128xf32> to vector<8x128xf32>
      %18 = arith.mulf %16, %17 : vector<8x128xf32>
      %19 = vector.extract_strided_slice %12 {offsets = [0, 1], sizes = [8, 1], strides = [1, 1]} : vector<8x4xf32> to vector<8x1xf32>
      %20 = vector.extract_strided_slice %13 {offsets = [1, 0], sizes = [1, 128], strides = [1, 1]} : vector<4x128xf32> to vector<1x128xf32>
      %21 = vector.broadcast %19 : vector<8x1xf32> to vector<8x128xf32>
      %22 = vector.broadcast %20 : vector<1x128xf32> to vector<8x128xf32>
      %23 = arith.mulf %21, %22 : vector<8x128xf32>
      %24 = arith.addf %18, %23 : vector<8x128xf32>
      %25 = vector.extract_strided_slice %12 {offsets = [0, 2], sizes = [8, 1], strides = [1, 1]} : vector<8x4xf32> to vector<8x1xf32>
      %26 = vector.extract_strided_slice %13 {offsets = [2, 0], sizes = [1, 128], strides = [1, 1]} : vector<4x128xf32> to vector<1x128xf32>
      %27 = vector.broadcast %25 : vector<8x1xf32> to vector<8x128xf32>
      %28 = vector.broadcast %26 : vector<1x128xf32> to vector<8x128xf32>
      %29 = arith.mulf %27, %28 : vector<8x128xf32>
      %30 = arith.addf %24, %29 : vector<8x128xf32>
      %31 = vector.extract_strided_slice %12 {offsets = [0, 3], sizes = [8, 1], strides = [1, 1]} : vector<8x4xf32> to vector<8x1xf32>
      %32 = vector.extract_strided_slice %13 {offsets = [3, 0], sizes = [1, 128], strides = [1, 1]} : vector<4x128xf32> to vector<1x128xf32>
      %33 = vector.broadcast %31 : vector<8x1xf32> to vector<8x128xf32>
      %34 = vector.broadcast %32 : vector<1x128xf32> to vector<8x128xf32>
      %35 = arith.mulf %33, %34 : vector<8x128xf32>
      %36 = arith.addf %30, %35 : vector<8x128xf32>
      %c0_12 = arith.constant 0 : index
      %c0_13 = arith.constant 0 : index
      %37 = vector.load %arg8[%c0_12, %c0_13] : memref<8x128xf32, #tpu.memory_space<vmem>>, vector<8x128xf32>
      %38 = arith.addf %37, %36 : vector<8x128xf32>
      %c0_14 = arith.constant 0 : index
      %c0_15 = arith.constant 0 : index
      %39 = vector.load %arg7[%c0_14, %c0_15] : memref<1x128xf32, #tpu.memory_space<vmem>>, vector<1x128xf32>
      %40 = vector.broadcast %39 : vector<1x128xf32> to vector<8x128xf32>
      %41 = arith.addf %38, %40 : vector<8x128xf32>
      %c0_16 = arith.constant 0 : index
      %c0_17 = arith.constant 0 : index
      %42 = vector.load %arg8[%c0_16, %c0_17] : memref<8x128xf32, #tpu.memory_space<vmem>>, vector<8x128xf32>
      tpu.vector_store %arg8[%c0_16, %c0_17], %41 {strides = array<i32>} : memref<8x128xf32, #tpu.memory_space<vmem>>, vector<8x128xf32>,
    } else {
    }
    return
  }
  func.func @transform_0(%arg0: i32, %arg1: i32, %arg2: i32) -> (i32, i32) {
    %c0_i32 = arith.constant 0 : i32
    return %arg0, %arg2 : i32, i32
  }
  func.func @transform_1(%arg0: i32, %arg1: i32, %arg2: i32) -> (i32, i32) {
    %c0_i32 = arith.constant 0 : i32
    return %arg1, %arg2 : i32, i32
  }
  func.func @transform_2(%arg0: i32, %arg1: i32, %arg2: i32) -> (i32, i32) {
    %c0_i32 = arith.constant 0 : i32
    %c0_i32_0 = arith.constant 0 : i32
    return %arg0, %c0_i32 : i32, i32
  }
  func.func @transform_3(%arg0: i32, %arg1: i32, %arg2: i32) -> (i32, i32) {
    %c0_i32 = arith.constant 0 : i32
    %c0_i32_0 = arith.constant 0 : i32
    return %c0_i32, %arg1 : i32, i32
  }
  func.func @transform_4(%arg0: i32, %arg1: i32, %arg2: i32) -> (i32, i32) {
    %c0_i32 = arith.constant 0 : i32
    %c0_i32_0 = arith.constant 0 : i32
    return %c0_i32, %arg1 : i32, i32
  }
  func.func @transform_5(%arg0: i32, %arg1: i32, %arg2: i32) -> (i32, i32) {
    %c0_i32 = arith.constant 0 : i32
    return %arg0, %arg1 : i32, i32
  }
}

</mosaic_0001>

<bundles_post_ra>
// kernel: tpu_custom_call.1
= control target key start
LH: loop header
LB: loop body
LE: loop exit
PB: predicated region body
PF: predicated region fallthrough
CT: control target
= control target key end

     0   :  { %10 = vsyncpa [#allocation3], 0  ;;  %s373_s0 = inlined_call_operand.hbm [shape: f32[8,256], index: 0, kind: input, shape index: {}]   ;;  %s374_s1 = inlined_call_operand.hbm [shape: f32[128,256], index: 1, kind: input, shape index: {}]   ;;  %s375_s2 = inlined_call_operand.vmem [shape: f32[8,4], index: 2, kind: input, shape index: {}]   ;;  %s376_s3 = inlined_call_operand.vmem [shape: f32[4,128], index: 3, kind: input, shape index: {}]   ;;  %s377_s4 = inlined_call_operand.vmem [shape: f32[1,128], index: 4, kind: input, shape index: {}]   ;;  %s378_s5 = inlined_call_operand.hbm [shape: f32[8,128], index: 5, kind: output, shape index: {}]  }
   0x1   :  { %11 = vsyncpa [#allocation6], 0 }
   0x2   :  { %12 = vsyncpa [#allocation4], 0  ;;  %s316_s18 = smov [#allocation2]   ;;  %s317_s20 = smov [#allocation5]  }
   0x3   :  { %s19_s19 = sshll.u32 %s316_s18, 4  ;;  %s28_s21 = sshll.u32 %s317_s20, 4  ;;  %s20_s19 = int_to_ptr.vmem [resolvable:$true] %s19_s19  ;;  %s29_s21 = int_to_ptr.vmem [resolvable:$true] %s28_s21 }
   0x4   :  { %s258_s22 = scalar_lea.vmem %s20_s19, 256  ;;  %p263_p1 = scmp.lt.s32.totalorder %s20_s19, %s20_s19 }
   0x5   :  { %p259_p0 = scmp.ne.s32.totalorder %s20_s19, %s258_s22  ;;  %p264_p2 = scmp.lt.s32.totalorder %s258_s22, %s258_s22 }
   0x7   :  { %p265_p3 = por %p264_p2, %p263_p1 }
   0x9   :  { %p266_p4 = pnand %p265_p3, %p259_p0 }
   0xb   :  { %269 = shalt.err (!%p266_p4)
}
   0xc   :  { %22 = dma.hbm_to_vmem [thread:$0]  %s373_s0, 256, %s20_s19, [#allocation3]  }
   0xd   :  { %s278_s25 = scalar_lea.vmem %s29_s21, 4096  ;;  %p283_p6 = scmp.lt.s32.totalorder %s29_s21, %s29_s21 }
   0xe   :  { %p279_p5 = scmp.ne.s32.totalorder %s29_s21, %s278_s25  ;;  %p284_p7 = scmp.lt.s32.totalorder %s278_s25, %s278_s25 }
  0x10   :  { %p285_p8 = por %p284_p7, %p283_p6 }
  0x12   :  { %p286_p9 = pnand %p285_p8, %p279_p5 }
  0x14   :  { %289 = shalt.err (!%p286_p9)
}
  0x15   :  { %s318_s26 = smov 256   ;;  %s319_s27 = smov 16  }
  0x16   :  { %34 = dma.hbm_to_vmem [thread:$0]  %s374_s1, 4096, %s29_s21, [#allocation6], %s318_s26, %s318_s26, %s319_s27  }
  0x17   :  { %310 = dma.done.wait [#allocation3], 256  }
  0x18   :  { %311 = vsyncadd [#allocation3], 4294967040 }
  0x19   :  { %312 = dma.done.wait [#allocation6], 4096  }
  0x1a   :  { %313 = vsyncadd [#allocation6], 4294963200  ;;  %v320_v0 = vmov 0   ;;  %v321_v1 = vmov 2   ;;  %v80_v2 = vld [vmem:[#allocation5 + $0xf8] sm:$0xff]  ;;  %v79_v3 = vld [vmem:[#allocation5 + $0xf0] sm:$0xff]  ;;  %v173_v39 = vlaneseq }
  0x1b   :  { %245 = vset.pattern.permute.xlu0 %v320_v0  ;;  %247 = vset.pattern.permute.xlu1 %v321_v1  ;;  %v78_v4 = vld [vmem:[#allocation5 + $0xe8] sm:$0xff]  ;;  %v77_v5 = vld [vmem:[#allocation5 + $0xe0] sm:$0xff]  ;;  %v76_v6 = vld [vmem:[#allocation5 + $0xd8] sm:$0xff]  ;;  %v322_v15 = vmov 1   ;;  %v323_v16 = vmov 3  }
  0x1c   :  { %81 = vmatprep.subr.mxu0 %v80_v2  ;;  %v75_v7 = vld [vmem:[#allocation5 + $0xd0] sm:$0xff]  ;;  %v74_v8 = vld [vmem:[#allocation5 + $0xc8] sm:$0xff]  ;;  %v48_v9 = vld [vmem:[#allocation2 + $0x8] sm:$0xff]  ;;  %v174_v40 = vshrl.u32 %v173_v39, 7 }
  0x1d   :  { %82 = vmatpush1.xpose.msra.mxu0 %v79_v3  ;;  %v73_v10 = vld [vmem:[#allocation5 + $0xc0] sm:$0xff]  ;;  %145 = vmatprep.mubr.f32.mxu0 %v48_v9  ;;  %v166_v11 = vld [vmem:[%s375_s2] sm:$0xff]  ;;  %v72_v12 = vld [vmem:[#allocation5 + $0xb8] sm:$0xff] }
  0x1e   :  { %83 = vmatprep.subr.mxu0 %v78_v4  ;;  %170 = vperm.xlu0 %245, %v166_v11   ;;  %v71_v13 = vld [vmem:[#allocation5 + $0xb0] sm:$0xff]  ;;  %v70_v14 = vld [vmem:[#allocation5 + $0xa8] sm:$0xff]  ;;  %v69_v17 = vld [vmem:[#allocation5 + $0xa0] sm:$0xff]  ;;  %v175_v42 = vsub.s32 0, %v174_v40  ;;  %v184_v43 = vsub.s32 1, %v174_v40  ;;  %v194_v46 = vsub.s32 2, %v174_v40 }
  0x1f   :  { %189 = vperm.xlu1 %247, %v166_v11   ;;  %v68_v18 = vld [vmem:[#allocation5 + $0x98] sm:$0xff]  ;;  %v67_v19 = vld [vmem:[#allocation5 + $0x90] sm:$0xff]  ;;  %v66_v20 = vld [vmem:[#allocation5 + $0x88] sm:$0xff]  ;;  %v204_v53 = vsub.s32 3, %v174_v40 }
  0x20   :  { %v65_v21 = vld [vmem:[#allocation5 + $0x80] sm:$0xff]  ;;  %v64_v22 = vld [vmem:[#allocation5 + $0x78] sm:$0xff]  ;;  %v63_v23 = vld [vmem:[#allocation5 + $0x70] sm:$0xff] }
  0x21   :  { %84 = vmatpush1.xpose.msra.mxu0 %v77_v5  ;;  %v62_v24 = vld [vmem:[#allocation5 + $0x68] sm:$0xff]  ;;  %v61_v25 = vld [vmem:[#allocation5 + $0x60] sm:$0xff]  ;;  %v60_v26 = vld [vmem:[#allocation5 + $0x58] sm:$0xff] }
  0x22   :  { %85 = vmatprep.subr.mxu0 %v76_v6  ;;  %246 = vset.pattern.permute.xlu0 %v322_v15  ;;  %v59_v27 = vld [vmem:[#allocation5 + $0x50] sm:$0xff]  ;;  %v58_v28 = vld [vmem:[#allocation5 + $0x48] sm:$0xff]  ;;  %v57_v29 = vld [vmem:[#allocation5 + $0x40] sm:$0xff] }
  0x23   :  { %248 = vset.pattern.permute.xlu1 %v323_v16  ;;  %179 = vperm.xlu0 %246, %v166_v11   ;;  %v56_v30 = vld [vmem:[#allocation5 + $0x38] sm:$0xff]  ;;  %v55_v31 = vld [vmem:[#allocation5 + $0x30] sm:$0xff]  ;;  %v54_v32 = vld [vmem:[#allocation5 + $0x28] sm:$0xff] }
  0x24   :  { %199 = vperm.xlu1 %248, %v166_v11   ;;  %v53_v33 = vld [vmem:[#allocation5 + $0x20] sm:$0xff]  ;;  %v52_v34 = vld [vmem:[#allocation5 + $0x18] sm:$0xff]  ;;  %v51_v35 = vld [vmem:[#allocation5 + $0x10] sm:$0xff] }
  0x25   :  { %86 = vmatpush1.xpose.msra.mxu0 %v75_v7  ;;  %v50_v36 = vld [vmem:[#allocation5 + $0x8] sm:$0xff]  ;;  %v49_v37 = vld [vmem:[#allocation5] sm:$0xff]  ;;  %v47_v38 = vld [vmem:[#allocation2] sm:$0xff] }
  0x26   :  { %87 = vmatprep.subr.mxu0 %v74_v8  ;;  %v167_v44 = vld [vmem:[%s376_s3] sm:$0xf]  ;;  %s324_s3 = smov [#allocation7]  }
  0x27   :  { %249 = vset.pattern.permute.xlu0 %v323_v16  ;;  %v176_v45 = vrot.slane %v167_v44, %v175_v42  ;;  %v185_v47 = vrot.slane %v167_v44, %v184_v43  ;;  %v195_v51 = vrot.slane %v167_v44, %v194_v46  ;;  %v205_v56 = vrot.slane %v167_v44, %v204_v53  ;;  %v235_v62 = vld [vmem:[%s377_s4] ss:$0 sm:$0xff]  ;;  %s225_s8 = sshll.u32 %s324_s3, 4  ;;  %s226_s8 = int_to_ptr.vmem [resolvable:$true] %s225_s8 }
  0x28   :  { %s290_s9 = scalar_lea.vmem %s226_s8, 128  ;;  %p295_p11 = scmp.lt.s32.totalorder %s226_s8, %s226_s8 }
  0x29   :  { %88 = vmatpush1.xpose.msra.mxu0 %v73_v10  ;;  %p291_p10 = scmp.ne.s32.totalorder %s226_s8, %s290_s9  ;;  %p296_p12 = scmp.lt.s32.totalorder %s290_s9, %s290_s9 }
  0x2a   :  { %89 = vmatprep.subr.mxu0 %v72_v12 }
  0x2b   :  { %p297_p13 = por %p296_p12, %p295_p11 }
  0x2d   :  { %90 = vmatpush1.xpose.msra.mxu0 %v71_v13  ;;  %p298_p0 = pnand %p297_p13, %p291_p10 }
  0x2e   :  { %91 = vmatprep.subr.mxu0 %v70_v14 }
  0x31   :  { %92 = vmatpush1.xpose.msra.mxu0 %v69_v17 }
  0x32   :  { %93 = vmatprep.subr.mxu0 %v68_v18 }
  0x35   :  { %94 = vmatpush1.xpose.msra.mxu0 %v67_v19 }
  0x36   :  { %95 = vmatprep.subr.mxu0 %v66_v20 }
  0x39   :  { %96 = vmatpush1.xpose.msra.mxu0 %v65_v21 }
  0x3a   :  { %97 = vmatprep.subr.mxu0 %v64_v22 }
  0x3d   :  { %98 = vmatpush1.xpose.msra.mxu0 %v63_v23 }
  0x3e   :  { %99 = vmatprep.subr.mxu0 %v62_v24 }
  0x41   :  { %100 = vmatpush1.xpose.msra.mxu0 %v61_v25 }
  0x42   :  { %101 = vmatprep.subr.mxu0 %v60_v26 }
  0x45   :  { %102 = vmatpush1.xpose.msra.mxu0 %v59_v27 }
  0x46   :  { %103 = vmatprep.subr.mxu0 %v58_v28 }
  0x49   :  { %104 = vmatpush1.xpose.msra.mxu0 %v57_v29 }
  0x4a   :  { %105 = vmatprep.subr.mxu0 %v56_v30 }
  0x4d   :  { %106 = vmatpush1.xpose.msra.mxu0 %v55_v31 }
  0x4e   :  { %107 = vmatprep.subr.mxu0 %v54_v32 }
  0x51   :  { %108 = vmatpush1.xpose.msra.mxu0 %v53_v33 }
  0x52   :  { %109 = vmatprep.subr.mxu0 %v52_v34 }
  0x55   :  { %110 = vmatpush1.xpose.msra.mxu0 %v51_v35 }
  0x56   :  { %111 = vmatprep.subr.mxu0 %v50_v36 }
  0x59   :  { %112 = vmatpush1.xpose.msra.mxu0 %v49_v37 }
  0x5c   :  { %146 = vmatmul.mubr.f32.vlgmr.msra.gmra.mxu0 %v47_v38 }
  0x99   :  { %v171_v41 = vpop.permute.xlu0 %170 }
  0x9a   :  { %v190_v49 = vpop.permute.xlu1 %189  ;;  %v177_v50 = vmul.f32 %v176_v45, %v171_v41 }
  0x9b   :  { %v196_v54 = vmul.f32 %v195_v51, %v190_v49 }
  0x9e   :  { %v180_v48 = vpop.permute.xlu0 %179 }
  0x9f   :  { %v186_v52 = vmul.f32 %v185_v47, %v180_v48  ;;  %v200_v57 = vpop.permute.xlu1 %199 }
  0xa0   :  { %v206_v59 = vmul.f32 %v205_v56, %v200_v57 }
  0xa1   :  { %v187_v55 = vadd.f32 %v186_v52, %v177_v50 }
  0xa3   :  { %v197_v58 = vadd.f32 %v196_v54, %v187_v55 }
  0xa5   :  { %v207_v60 = vadd.f32 %v206_v59, %v197_v58 }
 0x11c   :  { %v147_v61 = vpop.f32.mrf.mxu0 }
 0x11d   :  { %v209_v63 = vadd.f32 %v207_v60, %v147_v61 }
 0x11e   :  { %v149_v0 = vpop.f32.mrf.mxu0 }
 0x11f   :  { %v217_v1 = vadd.f32 %v235_v62, %v209_v63 }
 0x121   :  { %218 = vst [vmem:[#allocation7] sm:$0xff] %v217_v1 }
 0x122   :  { %301 = shalt.err (!%p298_p0)
}
 0x123   :  { %228 = dma.vmem_to_hbm [thread:$0]  %s226_s8, 128, %s378_s5, [#allocation4]  }
 0x124   :  { %314 = dma.done.wait [#allocation4], 128  }
 0x125   :  { %315 = vsyncadd [#allocation4], 4294967168 }
 0x126   :  { %232 = vsyncpa [#allocation3], 1 }
 0x127   :  { %233 = vsyncpa [#allocation6], 1 }
 0x128   :  { %234 = vsyncpa [#allocation4], 1 }

</bundles_post_ra>
